<compile_context>
chip_gen: v6e
topology: v6e:2x2x1
jax: 0.10.0
libtpu: 0.0.40
codegen_flags: <defaults>
</compile_context>

<pallas_src>
import math

import numpy as np
import jax
import jax.numpy as jnp
from jax.experimental import pallas as pl
from jax.experimental.pallas import tpu as pltpu

KH = KW = 6
H = W = 9
OH = OW = H - KH + 1            # 4
C_OUT = 32
FLAT = C_OUT * OH * OW          # 512
HID = 128
ACTION_DIM = H * W              # 81 (so the boolean mask is elementwise)
LANES = 128                     # padded width of the fused head / s vector
VALUE_COL = ACTION_DIM          # lane 81 carries the critic value
BIAS_ROW = ACTION_DIM           # row 81 of folded conv matrix carries conv bias
NEG_MASK = -1000000000.0


# --------------------------- fused Pallas kernel -----------------------------

def _a2c_fused_kernel(s_ref, a_ref, w1_ref, b1_ref,
                      w2_ref, b2_ref, wh_ref, bh_ref, out_ref):
    s = s_ref[...]                                                     # (1,128)

    # conv (pre-folded to dense; bias folded into row BIAS_ROW since the
    # padded lanes of s are exactly 1.0) + ReLU -> channel-major flat act.
    x0 = jnp.dot(s, a_ref[...], preferred_element_type=jnp.float32)
    x0 = jnp.maximum(x0, 0.0)                                          # (1,512)

    # lin1 + ReLU
    h1 = jnp.dot(x0, w1_ref[...], preferred_element_type=jnp.float32) + b1_ref[...]
    h1 = jnp.maximum(h1, 0.0)                                          # (1,128)

    # lin2 + ReLU
    h2 = jnp.dot(h1, w2_ref[...], preferred_element_type=jnp.float32) + b2_ref[...]
    h2 = jnp.maximum(h2, 0.0)                                          # (1,512)

    # merged actor+critic head: lanes 0..80 = actor logits, lane 81 = value
    head = jnp.dot(h2, wh_ref[...], preferred_element_type=jnp.float32) + bh_ref[...]

    lane = jax.lax.broadcasted_iota(jnp.int32, head.shape, 1)          # (1,128)
    is_action = lane < ACTION_DIM

    # PyTorch mask: occupied cells -> -1e9 (s padding lanes are 1.0 > 0 too,
    # but the -inf clamp below is what actually kills non-action lanes).
    logits = jnp.where(s > 0.0, NEG_MASK, head)
    logits = jnp.where(is_action, logits, -jnp.inf)

    m = jnp.max(logits, axis=-1, keepdims=True)
    e = jnp.exp(logits - m)
    inv = pl.reciprocal(jnp.sum(e, axis=-1, keepdims=True), approx=True)
    probs = e * inv

    # single lane-dense store: [softmax probs (81) | value (1) | zeros (46)]
    out_ref[...] = jnp.where(is_action, probs,
                             jnp.where(lane == VALUE_COL, head, 0.0))


def _vmem_spec():
    return pl.BlockSpec(memory_space=pltpu.MemorySpace.VMEM)


_COST = pl.CostEstimate(
    flops=2 * (LANES * FLAT + FLAT * HID + HID * FLAT + FLAT * LANES),
    transcendentals=LANES + 1,
    bytes_accessed=4 * (LANES * FLAT + FLAT * HID + HID * FLAT + FLAT * LANES
                        + HID + FLAT + LANES + 2 * LANES),
)


# ----------------------------- forward wrapper --------------------------------

def a2c_forward(s, packed):
    """Returns (value: (1,), action: (81,)) matching the PyTorch forward."""
    s = s.astype(jnp.float32)
    # (1,128) board vector: lanes 0..80 = s.flatten(); pad lanes = 1.0.
    # Lane BIAS_ROW being 1.0 is what injects the conv bias (folded into A);
    # the remaining pad rows of A are zero so the other 1.0s are inert.
    s_in = jnp.concatenate(
        [s.reshape(1, ACTION_DIM),
         jnp.ones((1, LANES - ACTION_DIM), jnp.float32)], axis=1)

    out = pl.pallas_call(
        _a2c_fused_kernel,
        out_shape=jax.ShapeDtypeStruct((1, LANES), jnp.float32),
        in_specs=[_vmem_spec()] * 8,
        out_specs=_vmem_spec(),
        cost_estimate=_COST,
    )(s_in, packed["A"], packed["w1"], packed["b1"],
      packed["w2"], packed["b2"], packed["wh"], packed["bh"])

    value = out[0, VALUE_COL:VALUE_COL + 1]       # (1,)
    action = out[0, :ACTION_DIM]                  # (81,)
    return value, action


# ------------------------ one-time parameter packing --------------------------

def pack_params(params):
    """Fold conv (+ bias) into a dense matrix, pre-transpose linears, merge heads.

    Runs once outside the jitted forward (pure numpy), so the per-call graph
    contains no weight relayouts.
    """
    conv_w = np.asarray(params["conv_w"], np.float32)       # (32,1,6,6)
    conv_b = np.asarray(params["conv_b"], np.float32)       # (32,)

    # A[i, j] with i = flat board index, j = c*16 + oh*4 + ow
    A = np.zeros((H, W, C_OUT, OH, OW), np.float32)
    for kh in range(KH):
        for kw in range(KW):
            for oh in range(OH):
                for ow in range(OW):
                    A[oh + kh, ow + kw, :, oh, ow] = conv_w[:, 0, kh, kw]
    A = A.reshape(H * W, FLAT)                               # (81, 512)
    A_pad = np.zeros((LANES, FLAT), np.float32)
    A_pad[:ACTION_DIM] = A                                   # rows >= 81 zero
    # conv bias folded in: lane BIAS_ROW of the padded state vector is 1.0
    A_pad[BIAS_ROW] = np.repeat(conv_b, OH * OW)             # (512,)

    w1 = np.asarray(params["lin1_w"], np.float32).T          # (512, 128)
    b1 = np.asarray(params["lin1_b"], np.float32).reshape(1, HID)
    w2 = np.asarray(params["lin2_w"], np.float32).T          # (128, 512)
    b2 = np.asarray(params["lin2_b"], np.float32).reshape(1, FLAT)

    fc_a_w = np.asarray(params["fc_a_w"], np.float32)        # (81, 512)
    fc_a_b = np.asarray(params["fc_a_b"], np.float32)        # (81,)
    fc_c_w = np.asarray(params["fc_c_w"], np.float32)        # (1, 512)
    fc_c_b = np.asarray(params["fc_c_b"], np.float32)        # (1,)

    wh = np.zeros((FLAT, LANES), np.float32)
    wh[:, :ACTION_DIM] = fc_a_w.T
    wh[:, VALUE_COL] = fc_c_w.reshape(-1)
    bh = np.zeros((1, LANES), np.float32)
    bh[0, :ACTION_DIM] = fc_a_b
    bh[0, VALUE_COL] = fc_c_b[0]

    return dict(A=jnp.asarray(A_pad),
                w1=jnp.asarray(w1), b1=jnp.asarray(b1),
                w2=jnp.asarray(w2), b2=jnp.asarray(b2),
                wh=jnp.asarray(wh), bh=jnp.asarray(bh))


# ----------------------- deterministic parameter init -------------------------

def _linear_init(key, in_f, out_f):
    kw, kb = jax.random.split(key)
    bound = 1.0 / math.sqrt(in_f)
    w = jax.random.uniform(kw, (out_f, in_f), jnp.float32, -bound, bound)
    b = jax.random.uniform(kb, (out_f,), jnp.float32, -bound, bound)
    return w, b


def init_params(key):
    k_conv, k1, k2, k_c, k_a = jax.random.split(key, 5)
    kcw, kcb = jax.random.split(k_conv)
    fan_in = 1 * KH * KW
    bound = 1.0 / math.sqrt(fan_in)
    conv_w = jax.random.uniform(kcw, (C_OUT, 1, KH, KW), jnp.float32, -bound, bound)
    conv_b = jax.random.uniform(kcb, (C_OUT,), jnp.float32, -bound, bound)
    lin1_w, lin1_b = _linear_init(k1, FLAT, HID)          # Linear(512, 128)
    lin2_w, lin2_b = _linear_init(k2, HID, FLAT)          # Linear(128, 512)
    fc_c_w, fc_c_b = _linear_init(k_c, FLAT, 1)           # Linear(512, 1)
    fc_a_w, fc_a_b = _linear_init(k_a, FLAT, ACTION_DIM)  # Linear(512, action_dim)
    return dict(conv_w=conv_w, conv_b=conv_b,
                lin1_w=lin1_w, lin1_b=lin1_b,
                lin2_w=lin2_w, lin2_b=lin2_b,
                fc_c_w=fc_c_w, fc_c_b=fc_c_b,
                fc_a_w=fc_a_w, fc_a_b=fc_a_b)


# --------------------------- pure-JAX reference -------------------------------

def a2c_reference(s, params):
    """Reference forward (real conv + dense layers) for validation."""
    hp = jax.lax.Precision.HIGHEST
    x = s.reshape(1, 1, H, W).astype(jnp.float32)
    x0 = jax.lax.conv_general_dilated(
        x, params["conv_w"].astype(jnp.float32), window_strides=(1, 1),
        padding="VALID", dimension_numbers=("NCHW", "OIHW", "NCHW"),
        precision=hp)
    x0 = jnp.maximum(x0 + params["conv_b"].reshape(1, C_OUT, 1, 1), 0.0)
    flat = x0.reshape(-1)                                  # torch .view(-1)
    h1 = jnp.maximum(jnp.dot(params["lin1_w"], flat, precision=hp)
                     + params["lin1_b"], 0.0)
    h2 = jnp.maximum(jnp.dot(params["lin2_w"], h1, precision=hp)
                     + params["lin2_b"], 0.0)
    value = jnp.dot(params["fc_c_w"], h2, precision=hp) + params["fc_c_b"]
    logits = jnp.dot(params["fc_a_w"], h2, precision=hp) + params["fc_a_b"]
    logits = jnp.where(s.reshape(-1) > 0.0, NEG_MASK, logits)
    action = jax.nn.softmax(logits)
    return value, action


# TODO(synk): torch.optim.Adam / Categorical sampling are training/acting-time
# utilities outside forward(); not part of the kernel.

if __name__ == "__main__":
    key = jax.random.PRNGKey(0)
    k_state, k_params = jax.random.split(key)
    params = init_params(k_params)
    packed = pack_params(params)          # one-time, outside jit

    # 9x9 board: conv -> (32,4,4) -> 512 features; action_dim = 81 = 9*9.
    s = jax.random.normal(k_state, (H, W), jnp.float32)

    value, action = jax.jit(a2c_forward)(s, packed)
    jax.block_until_ready((value, action))

    # Validate against the pure-JAX reference (loose tolerance: kernel uses
    # the EUP approximate reciprocal and MXU default precision).
    ref_value, ref_action = a2c_reference(s, params)
    np.testing.assert_allclose(np.asarray(action), np.asarray(ref_action),
                               atol=5e-3, rtol=0)
    np.testing.assert_allclose(np.asarray(value), np.asarray(ref_value),
                               atol=2e-2, rtol=1e-2)
    assert abs(float(jnp.sum(action)) - 1.0) < 1e-3

    print("KERNEL_OK")
</pallas_src>

<mosaic_0001>
module attributes {stable_mosaic.version = 11 : i64} {
  func.func @_a2c_fused_kernel(%arg0: memref<1x128xf32, #tpu.memory_space<vmem>>, %arg1: memref<128x512xf32, #tpu.memory_space<vmem>>, %arg2: memref<512x128xf32, #tpu.memory_space<vmem>>, %arg3: memref<1x128xf32, #tpu.memory_space<vmem>>, %arg4: memref<128x512xf32, #tpu.memory_space<vmem>>, %arg5: memref<1x512xf32, #tpu.memory_space<vmem>>, %arg6: memref<512x128xf32, #tpu.memory_space<vmem>>, %arg7: memref<1x128xf32, #tpu.memory_space<vmem>>, %arg8: memref<1x128xf32, #tpu.memory_space<vmem>>) attributes {dimension_semantics = [], scalar_prefetch = 0 : i64, scratch_operands = 0 : i64, tpu.core_type = #tpu.core_type<tc>} {
    %c0 = arith.constant 0 : index
    %c0_0 = arith.constant 0 : index
    %0 = vector.load %arg0[%c0, %c0_0] : memref<1x128xf32, #tpu.memory_space<vmem>>, vector<1x128xf32>
    %c0_1 = arith.constant 0 : index
    %c0_2 = arith.constant 0 : index
    %1 = vector.load %arg1[%c0_1, %c0_2] : memref<128x512xf32, #tpu.memory_space<vmem>>, vector<128x512xf32>
    %cst = arith.constant dense<0.000000e+00> : vector<1x512xf32>
    %2 = tpu.matmul %0, %1, %cst {dimension_numbers = #tpu.dot_dimension_numbers<[1], [0], [0], [1], [0, 0, 1, 1], [], []>} : vector<1x128xf32>, vector<128x512xf32>, vector<1x512xf32> -> vector<1x512xf32>
    %cst_3 = arith.constant 0.000000e+00 : f32
    %3 = vector.broadcast %cst_3 : f32 to vector<1x512xf32>
    %4 = arith.maximumf %2, %3 : vector<1x512xf32>
    %c0_4 = arith.constant 0 : index
    %c0_5 = arith.constant 0 : index
    %5 = vector.load %arg2[%c0_4, %c0_5] : memref<512x128xf32, #tpu.memory_space<vmem>>, vector<512x128xf32>
    %cst_6 = arith.constant dense<0.000000e+00> : vector<1x128xf32>
    %6 = tpu.matmul %4, %5, %cst_6 {dimension_numbers = #tpu.dot_dimension_numbers<[1], [0], [0], [1], [0, 0, 1, 1], [], []>} : vector<1x512xf32>, vector<512x128xf32>, vector<1x128xf32> -> vector<1x128xf32>
    %c0_7 = arith.constant 0 : index
    %c0_8 = arith.constant 0 : index
    %7 = vector.load %arg3[%c0_7, %c0_8] : memref<1x128xf32, #tpu.memory_space<vmem>>, vector<1x128xf32>
    %8 = arith.addf %6, %7 : vector<1x128xf32>
    %cst_9 = arith.constant 0.000000e+00 : f32
    %9 = vector.broadcast %cst_9 : f32 to vector<1x128xf32>
    %10 = arith.maximumf %8, %9 : vector<1x128xf32>
    %c0_10 = arith.constant 0 : index
    %c0_11 = arith.constant 0 : index
    %11 = vector.load %arg4[%c0_10, %c0_11] : memref<128x512xf32, #tpu.memory_space<vmem>>, vector<128x512xf32>
    %cst_12 = arith.constant dense<0.000000e+00> : vector<1x512xf32>
    %12 = tpu.matmul %10, %11, %cst_12 {dimension_numbers = #tpu.dot_dimension_numbers<[1], [0], [0], [1], [0, 0, 1, 1], [], []>} : vector<1x128xf32>, vector<128x512xf32>, vector<1x512xf32> -> vector<1x512xf32>
    %c0_13 = arith.constant 0 : index
    %c0_14 = arith.constant 0 : index
    %13 = vector.load %arg5[%c0_13, %c0_14] : memref<1x512xf32, #tpu.memory_space<vmem>>, vector<1x512xf32>
    %14 = arith.addf %12, %13 : vector<1x512xf32>
    %cst_15 = arith.constant 0.000000e+00 : f32
    %15 = vector.broadcast %cst_15 : f32 to vector<1x512xf32>
    %16 = arith.maximumf %14, %15 : vector<1x512xf32>
    %c0_16 = arith.constant 0 : index
    %c0_17 = arith.constant 0 : index
    %17 = vector.load %arg6[%c0_16, %c0_17] : memref<512x128xf32, #tpu.memory_space<vmem>>, vector<512x128xf32>
    %cst_18 = arith.constant dense<0.000000e+00> : vector<1x128xf32>
    %18 = tpu.matmul %16, %17, %cst_18 {dimension_numbers = #tpu.dot_dimension_numbers<[1], [0], [0], [1], [0, 0, 1, 1], [], []>} : vector<1x512xf32>, vector<512x128xf32>, vector<1x128xf32> -> vector<1x128xf32>
    %c0_19 = arith.constant 0 : index
    %c0_20 = arith.constant 0 : index
    %19 = vector.load %arg7[%c0_19, %c0_20] : memref<1x128xf32, #tpu.memory_space<vmem>>, vector<1x128xf32>
    %20 = arith.addf %18, %19 : vector<1x128xf32>
    %21 = tpu.iota {dimensions = array<i32: 1>} : vector<1x128xi32>
    %c81_i32 = arith.constant 81 : i32
    %22 = vector.broadcast %c81_i32 : i32 to vector<1x128xi32>
    %23 = arith.cmpi slt, %21, %22 : vector<1x128xi32>
    %cst_21 = arith.constant 0.000000e+00 : f32
    %24 = vector.broadcast %cst_21 : f32 to vector<1x128xf32>
    %25 = arith.cmpf ogt, %0, %24 : vector<1x128xf32>
    %cst_22 = arith.constant -1.000000e+09 : f32
    %26 = vector.broadcast %cst_22 : f32 to vector<1x128xf32>
    %27 = arith.select %25, %26, %20 : vector<1x128xi1>, vector<1x128xf32>
    %cst_23 = arith.constant 0xFF800000 : f32
    %28 = vector.broadcast %cst_23 : f32 to vector<1x128xf32>
    %29 = arith.select %23, %27, %28 : vector<1x128xi1>, vector<1x128xf32>
    %cst_24 = arith.constant dense<0xFF800000> : vector<1xf32>
    %30 = vector.multi_reduction <maximumf>, %29, %cst_24 [1] : vector<1x128xf32> to vector<1xf32>
    %31 = vector.shape_cast %30 : vector<1xf32> to vector<1x1xf32>
    %32 = vector.broadcast %31 : vector<1x1xf32> to vector<1x128xf32>
    %33 = arith.subf %29, %32 : vector<1x128xf32>
    %34 = math.exp %33 : vector<1x128xf32>
    %cst_25 = arith.constant dense<0.000000e+00> : vector<1xf32>
    %35 = vector.multi_reduction <add>, %34, %cst_25 [1] : vector<1x128xf32> to vector<1xf32>
    %36 = vector.shape_cast %35 : vector<1xf32> to vector<1x1xf32>
    %37 = tpu.reciprocal %36 {approx = true} : vector<1x1xf32> -> vector<1x1xf32>
    %38 = vector.broadcast %37 : vector<1x1xf32> to vector<1x128xf32>
    %39 = arith.mulf %34, %38 : vector<1x128xf32>
    %c81_i32_26 = arith.constant 81 : i32
    %40 = vector.broadcast %c81_i32_26 : i32 to vector<1x128xi32>
    %41 = arith.cmpi eq, %21, %40 : vector<1x128xi32>
    %cst_27 = arith.constant 0.000000e+00 : f32
    %42 = vector.broadcast %cst_27 : f32 to vector<1x128xf32>
    %43 = arith.select %41, %20, %42 : vector<1x128xi1>, vector<1x128xf32>
    %44 = arith.select %23, %39, %43 : vector<1x128xi1>, vector<1x128xf32>
    %c0_28 = arith.constant 0 : index
    %c0_29 = arith.constant 0 : index
    %45 = vector.load %arg8[%c0_28, %c0_29] : memref<1x128xf32, #tpu.memory_space<vmem>>, vector<1x128xf32>
    tpu.vector_store %arg8[%c0_28, %c0_29], %44 {strides = array<i32>} : memref<1x128xf32, #tpu.memory_space<vmem>>, vector<1x128xf32>,
    return
  }
}

</mosaic_0001>

<bundles_post_ra>
// kernel: a2c_forward.1
= control target key start
LH: loop header
LB: loop body
LE: loop exit
PB: predicated region body
PF: predicated region fallthrough
CT: control target
= control target key end

     0   :  { %13 = vsyncpa [#allocation3], 0  ;;  %s1304_s0 = inlined_call_operand.vmem [shape: f32[1,128], index: 0, kind: input, shape index: {}]   ;;  %s1305_s1 = inlined_call_operand.hbm [shape: f32[128,512], index: 1, kind: input, shape index: {}]   ;;  %s1306_s2 = inlined_call_operand.hbm [shape: f32[512,128], index: 2, kind: input, shape index: {}]   ;;  %s1307_s3 = inlined_call_operand.vmem [shape: f32[1,128], index: 3, kind: input, shape index: {}]   ;;  %s1308_s4 = inlined_call_operand.hbm [shape: f32[128,512], index: 4, kind: input, shape index: {}]   ;;  %s1309_s5 = inlined_call_operand.vmem [shape: f32[1,512], index: 5, kind: input, shape index: {}]   ;;  %s1310_s6 = inlined_call_operand.hbm [shape: f32[512,128], index: 6, kind: input, shape index: {}]   ;;  %s1311_s7 = inlined_call_operand.vmem [shape: f32[1,128], index: 7, kind: input, shape index: {}]   ;;  %s1312_s8 = inlined_call_operand.vmem [shape: f32[1,128], index: 8, kind: output, shape index: {}]  }
   0x1   :  { %14 = vsyncpa [#allocation5], 0 }
   0x2   :  { %15 = vsyncpa [#allocation8], 0  ;;  %s1206_s27 = smov [#allocation4]  }
   0x3   :  { %s35_s28 = sshll.u32 %s1206_s27, 4  ;;  %s36_s28 = int_to_ptr.vmem [resolvable:$true] %s35_s28 }
   0x4   :  { %s1128_s29 = scalar_lea.vmem %s36_s28, 8192  ;;  %p1133_p1 = scmp.lt.s32.totalorder %s36_s28, %s36_s28 }
   0x5   :  { %p1129_p0 = scmp.ne.s32.totalorder %s36_s28, %s1128_s29  ;;  %p1134_p2 = scmp.lt.s32.totalorder %s1128_s29, %s1128_s29 }
   0x7   :  { %p1135_p3 = por %p1134_p2, %p1133_p1 }
   0x9   :  { %p1136_p4 = pnand %p1135_p3, %p1129_p0 }
   0xb   :  { %1139 = shalt.err (!%p1136_p4)
}
   0xc   :  { %s1207_s30 = smov 128   ;;  %s1208_s9 = smov 8  }
   0xd   :  { %41 = dma.hbm_to_vmem [thread:$0]  %s1306_s2, 8192, %s36_s28, [#allocation5], %s1207_s30, %s1207_s30, %s1208_s9  }
   0xe   :  { %s1209_s12 = smov [#allocation2]  }
   0xf   :  { %s23_s13 = sshll.u32 %s1209_s12, 4  ;;  %s24_s13 = int_to_ptr.vmem [resolvable:$true] %s23_s13 }
  0x10   :  { %s1148_s14 = scalar_lea.vmem %s24_s13, 8192  ;;  %p1153_p6 = scmp.lt.s32.totalorder %s24_s13, %s24_s13 }
  0x11   :  { %p1149_p5 = scmp.ne.s32.totalorder %s24_s13, %s1148_s14  ;;  %p1154_p7 = scmp.lt.s32.totalorder %s1148_s14, %s1148_s14 }
  0x13   :  { %p1155_p8 = por %p1154_p7, %p1153_p6 }
  0x15   :  { %p1156_p9 = pnand %p1155_p8, %p1149_p5 }
  0x17   :  { %1159 = shalt.err (!%p1156_p9)
}
  0x18   :  { %s1210_s15 = smov 512   ;;  %s1211_s16 = smov 32  }
  0x19   :  { %29 = dma.hbm_to_vmem [thread:$0]  %s1305_s1, 8192, %s24_s13, [#allocation3], %s1210_s15, %s1210_s15, %s1211_s16  }
  0x1a   :  { %s1212_s19 = smov [#allocation6]   ;;  %s1213_s21 = smov [#allocation7]  }
  0x1b   :  { %s49_s20 = sshll.u32 %s1212_s19, 4  ;;  %s63_s2 = sshll.u32 %s1213_s21, 4  ;;  %s50_s20 = int_to_ptr.vmem [resolvable:$true] %s49_s20  ;;  %s64_s2 = int_to_ptr.vmem [resolvable:$true] %s63_s2 }
  0x1c   :  { %s1168_s22 = scalar_lea.vmem %s50_s20, 8192  ;;  %p1173_p11 = scmp.lt.s32.totalorder %s50_s20, %s50_s20 }
  0x1d   :  { %p1169_p10 = scmp.ne.s32.totalorder %s50_s20, %s1168_s22  ;;  %p1174_p12 = scmp.lt.s32.totalorder %s1168_s22, %s1168_s22 }
  0x1f   :  { %p1175_p13 = por %p1174_p12, %p1173_p11 }
  0x21   :  { %p1176_p0 = pnand %p1175_p13, %p1169_p10 }
  0x23   :  { %1179 = shalt.err (!%p1176_p0)
}
  0x24   :  { %55 = dma.hbm_to_vmem [thread:$0]  %s1308_s4, 8192, %s50_s20, [#allocation5], %s1210_s15, %s1210_s15, %s1211_s16  }
  0x25   :  { %s1188_s25 = scalar_lea.vmem %s64_s2, 8192  ;;  %p1193_p2 = scmp.lt.s32.totalorder %s64_s2, %s64_s2 }
  0x26   :  { %p1189_p1 = scmp.ne.s32.totalorder %s64_s2, %s1188_s25  ;;  %p1194_p3 = scmp.lt.s32.totalorder %s1188_s25, %s1188_s25 }
  0x28   :  { %p1195_p4 = por %p1194_p3, %p1193_p2 }
  0x2a   :  { %p1196_p5 = pnand %p1195_p4, %p1189_p1 }
  0x2c   :  { %1199 = shalt.err (!%p1196_p5)
}
  0x2d   :  { %69 = dma.hbm_to_vmem [thread:$0]  %s1310_s6, 8192, %s64_s2, [#allocation8], %s1207_s30, %s1207_s30, %s1208_s9  }
  0x2e   :  { %1200 = dma.done.wait [#allocation3], 8192  }
  0x2f   :  { %1201 = vsyncadd [#allocation3], 4294959104 }
  0x30   :  { %1202 = dma.done.wait [#allocation5], 16384  }
  0x31   :  { %1203 = vsyncadd [#allocation5], 4294950912 }
  0x32   :  { %1204 = dma.done.wait [#allocation8], 8192  }
  0x33   :  { %1205 = vsyncadd [#allocation8], 4294959104  ;;  %v1214_v0 = vmov 0.0   ;;  %v146_v1 = vld [vmem:[#allocation2 + $0x1e8] sm:$0xff]  ;;  %v148_v2 = vld [vmem:[#allocation2 + $0x1f8] sm:$0xff]  ;;  %vm944_vm3 = vcmask 1040384  }
  0x34   :  { %213 = vmatprep.mubr.f32.mxu0 %v1214_v0  ;;  %284 = vmatprep.mubr.f32.mxu1 %v1214_v0  ;;  %v145_v3 = vld [vmem:[#allocation2 + $0x1e0] sm:$0xff]  ;;  %v147_v4 = vld [vmem:[#allocation2 + $0x1f0] sm:$0xff]  ;;  %v142_v5 = vld [vmem:[#allocation2 + $0x1c8] sm:$0xff] }
  0x35   :  { %149 = vmatprep.subr.mxu0 %v146_v1  ;;  %220 = vmatprep.subr.mxu1 %v148_v2  ;;  %v144_v6 = vld [vmem:[#allocation2 + $0x1d8] sm:$0xff]  ;;  %v141_v7 = vld [vmem:[#allocation2 + $0x1c0] sm:$0xff]  ;;  %v143_v8 = vld [vmem:[#allocation2 + $0x1d0] sm:$0xff] }
  0x36   :  { %150 = vmatpush1.msra.mxu0 %v145_v3  ;;  %221 = vmatpush1.msra.mxu1 %v147_v4  ;;  %v138_v9 = vld [vmem:[#allocation2 + $0x1a8] sm:$0xff]  ;;  %v140_v10 = vld [vmem:[#allocation2 + $0x1b8] sm:$0xff]  ;;  %v137_v11 = vld [vmem:[#allocation2 + $0x1a0] sm:$0xff] }
  0x37   :  { %151 = vmatprep.subr.mxu0 %v142_v5  ;;  %222 = vmatprep.subr.mxu1 %v144_v6  ;;  %v139_v12 = vld [vmem:[#allocation2 + $0x1b0] sm:$0xff]  ;;  %v134_v13 = vld [vmem:[#allocation2 + $0x188] sm:$0xff]  ;;  %v136_v14 = vld [vmem:[#allocation2 + $0x198] sm:$0xff] }
  0x38   :  { %152 = vmatpush1.msra.mxu0 %v141_v7  ;;  %223 = vmatpush1.msra.mxu1 %v143_v8  ;;  %v133_v15 = vld [vmem:[#allocation2 + $0x180] sm:$0xff]  ;;  %v135_v16 = vld [vmem:[#allocation2 + $0x190] sm:$0xff]  ;;  %v130_v17 = vld [vmem:[#allocation2 + $0x168] sm:$0xff] }
  0x39   :  { %153 = vmatprep.subr.mxu0 %v138_v9  ;;  %224 = vmatprep.subr.mxu1 %v140_v10  ;;  %v132_v18 = vld [vmem:[#allocation2 + $0x178] sm:$0xff]  ;;  %v129_v19 = vld [vmem:[#allocation2 + $0x160] sm:$0xff]  ;;  %v131_v20 = vld [vmem:[#allocation2 + $0x170] sm:$0xff] }
  0x3a   :  { %154 = vmatpush1.msra.mxu0 %v137_v11  ;;  %225 = vmatpush1.msra.mxu1 %v139_v12  ;;  %v126_v21 = vld [vmem:[#allocation2 + $0x148] sm:$0xff]  ;;  %v128_v22 = vld [vmem:[#allocation2 + $0x158] sm:$0xff]  ;;  %v125_v23 = vld [vmem:[#allocation2 + $0x140] sm:$0xff] }
  0x3b   :  { %155 = vmatprep.subr.mxu0 %v134_v13  ;;  %226 = vmatprep.subr.mxu1 %v136_v14  ;;  %v127_v24 = vld [vmem:[#allocation2 + $0x150] sm:$0xff]  ;;  %v122_v25 = vld [vmem:[#allocation2 + $0x128] sm:$0xff]  ;;  %v124_v26 = vld [vmem:[#allocation2 + $0x138] sm:$0xff] }
  0x3c   :  { %156 = vmatpush1.msra.mxu0 %v133_v15  ;;  %227 = vmatpush1.msra.mxu1 %v135_v16  ;;  %v121_v27 = vld [vmem:[#allocation2 + $0x120] sm:$0xff]  ;;  %v123_v28 = vld [vmem:[#allocation2 + $0x130] sm:$0xff]  ;;  %v118_v29 = vld [vmem:[#allocation2 + $0x108] sm:$0xff] }
  0x3d   :  { %157 = vmatprep.subr.mxu0 %v130_v17  ;;  %228 = vmatprep.subr.mxu1 %v132_v18  ;;  %v120_v30 = vld [vmem:[#allocation2 + $0x118] sm:$0xff]  ;;  %v117_v31 = vld [vmem:[#allocation2 + $0x100] sm:$0xff]  ;;  %v119_v32 = vld [vmem:[#allocation2 + $0x110] sm:$0xff] }
  0x3e   :  { %158 = vmatpush1.msra.mxu0 %v129_v19  ;;  %229 = vmatpush1.msra.mxu1 %v131_v20  ;;  %v114_v33 = vld [vmem:[#allocation2 + $0xe8] sm:$0xff]  ;;  %v116_v34 = vld [vmem:[#allocation2 + $0xf8] sm:$0xff]  ;;  %v113_v35 = vld [vmem:[#allocation2 + $0xe0] sm:$0xff] }
  0x3f   :  { %159 = vmatprep.subr.mxu0 %v126_v21  ;;  %230 = vmatprep.subr.mxu1 %v128_v22  ;;  %v115_v36 = vld [vmem:[#allocation2 + $0xf0] sm:$0xff]  ;;  %v110_v37 = vld [vmem:[#allocation2 + $0xc8] sm:$0xff]  ;;  %v112_v38 = vld [vmem:[#allocation2 + $0xd8] sm:$0xff] }
  0x40   :  { %160 = vmatpush1.msra.mxu0 %v125_v23  ;;  %231 = vmatpush1.msra.mxu1 %v127_v24  ;;  %v109_v39 = vld [vmem:[#allocation2 + $0xc0] sm:$0xff]  ;;  %v111_v40 = vld [vmem:[#allocation2 + $0xd0] sm:$0xff]  ;;  %v106_v41 = vld [vmem:[#allocation2 + $0xa8] sm:$0xff] }
  0x41   :  { %161 = vmatprep.subr.mxu0 %v122_v25  ;;  %232 = vmatprep.subr.mxu1 %v124_v26  ;;  %v108_v42 = vld [vmem:[#allocation2 + $0xb8] sm:$0xff]  ;;  %v105_v43 = vld [vmem:[#allocation2 + $0xa0] sm:$0xff]  ;;  %v107_v44 = vld [vmem:[#allocation2 + $0xb0] sm:$0xff] }
  0x42   :  { %162 = vmatpush1.msra.mxu0 %v121_v27  ;;  %233 = vmatpush1.msra.mxu1 %v123_v28  ;;  %v102_v45 = vld [vmem:[#allocation2 + $0x88] sm:$0xff]  ;;  %v104_v46 = vld [vmem:[#allocation2 + $0x98] sm:$0xff]  ;;  %v101_v47 = vld [vmem:[#allocation2 + $0x80] sm:$0xff] }
  0x43   :  { %163 = vmatprep.subr.mxu0 %v118_v29  ;;  %234 = vmatprep.subr.mxu1 %v120_v30  ;;  %v103_v48 = vld [vmem:[#allocation2 + $0x90] sm:$0xff]  ;;  %v98_v49 = vld [vmem:[#allocation2 + $0x68] sm:$0xff]  ;;  %v100_v50 = vld [vmem:[#allocation2 + $0x78] sm:$0xff] }
  0x44   :  { %164 = vmatpush1.msra.mxu0 %v117_v31  ;;  %235 = vmatpush1.msra.mxu1 %v119_v32  ;;  %v97_v51 = vld [vmem:[#allocation2 + $0x60] sm:$0xff]  ;;  %v99_v52 = vld [vmem:[#allocation2 + $0x70] sm:$0xff]  ;;  %v94_v53 = vld [vmem:[#allocation2 + $0x48] sm:$0xff] }
  0x45   :  { %165 = vmatprep.subr.mxu0 %v114_v33  ;;  %236 = vmatprep.subr.mxu1 %v116_v34  ;;  %v96_v54 = vld [vmem:[#allocation2 + $0x58] sm:$0xff]  ;;  %v93_v55 = vld [vmem:[#allocation2 + $0x40] sm:$0xff]  ;;  %v95_v56 = vld [vmem:[#allocation2 + $0x50] sm:$0xff] }
  0x46   :  { %166 = vmatpush1.msra.mxu0 %v113_v35  ;;  %237 = vmatpush1.msra.mxu1 %v115_v36  ;;  %v90_v57 = vld [vmem:[#allocation2 + $0x28] sm:$0xff]  ;;  %v92_v58 = vld [vmem:[#allocation2 + $0x38] sm:$0xff]  ;;  %v89_v59 = vld [vmem:[#allocation2 + $0x20] sm:$0xff] }
  0x47   :  { %167 = vmatprep.subr.mxu0 %v110_v37  ;;  %238 = vmatprep.subr.mxu1 %v112_v38  ;;  %v91_v60 = vld [vmem:[#allocation2 + $0x30] sm:$0xff]  ;;  %v86_v61 = vld [vmem:[#allocation2 + $0x8] sm:$0xff]  ;;  %v88_v62 = vld [vmem:[#allocation2 + $0x18] sm:$0xff] }
  0x48   :  { %168 = vmatpush1.msra.mxu0 %v109_v39  ;;  %239 = vmatpush1.msra.mxu1 %v111_v40  ;;  %v85_v63 = vld [vmem:[#allocation2] sm:$0xff]  ;;  %v87_v1 = vld [vmem:[#allocation2 + $0x10] sm:$0xff]  ;;  %v326_v3 = vld [vmem:[#allocation4 + $0xf8] sm:$0xff] }
  0x49   :  { %169 = vmatprep.subr.mxu0 %v106_v41  ;;  %240 = vmatprep.subr.mxu1 %v108_v42  ;;  %v1283_v2 = vld [vmem:[%s1304_s0] sm:$0x1]  ;;  %v358_v4 = vld [vmem:[#allocation4 + $0x1f8] sm:$0xff]  ;;  %v325_v7 = vld [vmem:[#allocation4 + $0xf0] sm:$0xff] }
  0x4a   :  { %170 = vmatpush1.msra.mxu0 %v105_v43  ;;  %241 = vmatpush1.msra.mxu1 %v107_v44  ;;  %v310_v5 = vld [vmem:[#allocation4 + $0x78] sm:$0xff]  ;;  %v357_v8 = vld [vmem:[#allocation4 + $0x1f0] sm:$0xff]  ;;  %v324_v11 = vld [vmem:[#allocation4 + $0xe8] sm:$0xff]  ;;  %vm941_vm0 = vcmp.gt.f32.partialorder %v1283_v2, 0.0 }
  0x4b   :  { %171 = vmatprep.subr.mxu0 %v102_v45  ;;  %242 = vmatprep.subr.mxu1 %v104_v46  ;;  %v342_v6 = vld [vmem:[#allocation4 + $0x178] sm:$0xff]  ;;  %v309_v9 = vld [vmem:[#allocation4 + $0x70] sm:$0xff]  ;;  %v356_v12 = vld [vmem:[#allocation4 + $0x1e8] sm:$0xff] }
  0x4c   :  { %172 = vmatpush1.msra.mxu0 %v101_v47  ;;  %243 = vmatpush1.msra.mxu1 %v103_v48  ;;  %v341_v10 = vld [vmem:[#allocation4 + $0x170] sm:$0xff]  ;;  %v308_v13 = vld [vmem:[#allocation4 + $0x68] sm:$0xff]  ;;  %v323_v15 = vld [vmem:[#allocation4 + $0xe0] sm:$0xff] }
  0x4d   :  { %173 = vmatprep.subr.mxu0 %v98_v49  ;;  %244 = vmatprep.subr.mxu1 %v100_v50  ;;  %v340_v14 = vld [vmem:[#allocation4 + $0x168] sm:$0xff]  ;;  %v355_v16 = vld [vmem:[#allocation4 + $0x1e0] sm:$0xff]  ;;  %v322_v19 = vld [vmem:[#allocation4 + $0xd8] sm:$0xff] }
  0x4e   :  { %174 = vmatpush1.msra.mxu0 %v97_v51  ;;  %245 = vmatpush1.msra.mxu1 %v99_v52  ;;  %v307_v17 = vld [vmem:[#allocation4 + $0x60] sm:$0xff]  ;;  %v354_v20 = vld [vmem:[#allocation4 + $0x1d8] sm:$0xff]  ;;  %v321_v23 = vld [vmem:[#allocation4 + $0xd0] sm:$0xff] }
  0x4f   :  { %175 = vmatprep.subr.mxu0 %v94_v53  ;;  %246 = vmatprep.subr.mxu1 %v96_v54  ;;  %v339_v18 = vld [vmem:[#allocation4 + $0x160] sm:$0xff]  ;;  %v306_v21 = vld [vmem:[#allocation4 + $0x58] sm:$0xff]  ;;  %v353_v24 = vld [vmem:[#allocation4 + $0x1d0] sm:$0xff] }
  0x50   :  { %176 = vmatpush1.msra.mxu0 %v93_v55  ;;  %247 = vmatpush1.msra.mxu1 %v95_v56  ;;  %v338_v22 = vld [vmem:[#allocation4 + $0x158] sm:$0xff]  ;;  %v305_v25 = vld [vmem:[#allocation4 + $0x50] sm:$0xff]  ;;  %v320_v27 = vld [vmem:[#allocation4 + $0xc8] sm:$0xff] }
  0x51   :  { %177 = vmatprep.subr.mxu0 %v90_v57  ;;  %248 = vmatprep.subr.mxu1 %v92_v58  ;;  %v337_v26 = vld [vmem:[#allocation4 + $0x150] sm:$0xff]  ;;  %v352_v28 = vld [vmem:[#allocation4 + $0x1c8] sm:$0xff]  ;;  %v319_v31 = vld [vmem:[#allocation4 + $0xc0] sm:$0xff] }
  0x52   :  { %178 = vmatpush1.msra.mxu0 %v89_v59  ;;  %249 = vmatpush1.msra.mxu1 %v91_v60  ;;  %v304_v29 = vld [vmem:[#allocation4 + $0x48] sm:$0xff]  ;;  %v351_v32 = vld [vmem:[#allocation4 + $0x1c0] sm:$0xff]  ;;  %v318_v35 = vld [vmem:[#allocation4 + $0xb8] sm:$0xff] }
  0x53   :  { %179 = vmatprep.subr.mxu0 %v86_v61  ;;  %250 = vmatprep.subr.mxu1 %v88_v62  ;;  %v336_v30 = vld [vmem:[#allocation4 + $0x148] sm:$0xff]  ;;  %v303_v33 = vld [vmem:[#allocation4 + $0x40] sm:$0xff]  ;;  %v350_v36 = vld [vmem:[#allocation4 + $0x1b8] sm:$0xff] }
  0x54   :  { %180 = vmatpush1.msra.mxu0 %v85_v63  ;;  %251 = vmatpush1.msra.mxu1 %v87_v1  ;;  %v335_v34 = vld [vmem:[#allocation4 + $0x140] sm:$0xff]  ;;  %v302_v37 = vld [vmem:[#allocation4 + $0x38] sm:$0xff]  ;;  %v317_v39 = vld [vmem:[#allocation4 + $0xb0] sm:$0xff] }
  0x55   :  { %214 = vmatmul.mubr.f32.vlgmr.msra.gmra.mxu0 %v1283_v2  ;;  %285 = vmatmul.mubr.f32.vlgmr.msra.gmra.mxu1 %v1283_v2  ;;  %v334_v38 = vld [vmem:[#allocation4 + $0x138] sm:$0xff]  ;;  %v349_v40 = vld [vmem:[#allocation4 + $0x1b0] sm:$0xff]  ;;  %v316_v43 = vld [vmem:[#allocation4 + $0xa8] sm:$0xff] }
  0x56   :  { %967 = vmatprep.subr.mxu0 %v326_v3  ;;  %1002 = vmatprep.subr.mxu1 %v358_v4  ;;  %v301_v41 = vld [vmem:[#allocation4 + $0x30] sm:$0xff]  ;;  %v348_v44 = vld [vmem:[#allocation4 + $0x1a8] sm:$0xff]  ;;  %v315_v47 = vld [vmem:[#allocation4 + $0xa0] sm:$0xff] }
  0x57   :  { %968 = vmatpush3.msra.mxu0 %v310_v5  ;;  %1003 = vmatpush3.msra.mxu1 %v342_v6  ;;  %v333_v42 = vld [vmem:[#allocation4 + $0x130] sm:$0xff]  ;;  %v300_v45 = vld [vmem:[#allocation4 + $0x28] sm:$0xff]  ;;  %v347_v48 = vld [vmem:[#allocation4 + $0x1a0] sm:$0xff] }
  0x58   :  { %969 = vmatprep.subr.mxu0 %v325_v7  ;;  %1004 = vmatprep.subr.mxu1 %v357_v8  ;;  %v332_v46 = vld [vmem:[#allocation4 + $0x128] sm:$0xff]  ;;  %v299_v49 = vld [vmem:[#allocation4 + $0x20] sm:$0xff]  ;;  %v314_v51 = vld [vmem:[#allocation4 + $0x98] sm:$0xff] }
  0x59   :  { %970 = vmatpush3.msra.mxu0 %v309_v9  ;;  %1005 = vmatpush3.msra.mxu1 %v341_v10  ;;  %v331_v50 = vld [vmem:[#allocation4 + $0x120] sm:$0xff]  ;;  %v346_v52 = vld [vmem:[#allocation4 + $0x198] sm:$0xff]  ;;  %v313_v55 = vld [vmem:[#allocation4 + $0x90] sm:$0xff] }
  0x5a   :  { %971 = vmatprep.subr.mxu0 %v324_v11  ;;  %1006 = vmatprep.subr.mxu1 %v356_v12  ;;  %v298_v53 = vld [vmem:[#allocation4 + $0x18] sm:$0xff]  ;;  %v345_v56 = vld [vmem:[#allocation4 + $0x190] sm:$0xff]  ;;  %v312_v59 = vld [vmem:[#allocation4 + $0x88] sm:$0xff] }
  0x5b   :  { %972 = vmatpush3.msra.mxu0 %v308_v13  ;;  %1007 = vmatpush3.msra.mxu1 %v340_v14  ;;  %v330_v54 = vld [vmem:[#allocation4 + $0x118] sm:$0xff]  ;;  %v297_v57 = vld [vmem:[#allocation4 + $0x10] sm:$0xff]  ;;  %v344_v60 = vld [vmem:[#allocation4 + $0x188] sm:$0xff] }
  0x5c   :  { %973 = vmatprep.subr.mxu0 %v323_v15  ;;  %1008 = vmatprep.subr.mxu1 %v355_v16  ;;  %v329_v58 = vld [vmem:[#allocation4 + $0x110] sm:$0xff]  ;;  %v296_v61 = vld [vmem:[#allocation4 + $0x8] sm:$0xff]  ;;  %v311_v63 = vld [vmem:[#allocation4 + $0x80] sm:$0xff] }
  0x5d   :  { %974 = vmatpush3.msra.mxu0 %v307_v17  ;;  %1009 = vmatpush3.msra.mxu1 %v339_v18  ;;  %v328_v62 = vld [vmem:[#allocation4 + $0x108] sm:$0xff]  ;;  %v343_v1 = vld [vmem:[#allocation4 + $0x180] sm:$0xff]  ;;  %v564_v6 = vld [vmem:[#allocation6 + $0x1f8] sm:$0xff] }
  0x5e   :  { %975 = vmatprep.subr.mxu0 %v322_v19  ;;  %1010 = vmatprep.subr.mxu1 %v354_v20  ;;  %v295_v3 = vld [vmem:[#allocation4] sm:$0xff]  ;;  %v562_v5 = vld [vmem:[#allocation6 + $0x1e8] sm:$0xff]  ;;  %v563_v16 = vld [vmem:[#allocation6 + $0x1f0] sm:$0xff] }
  0x5f   :  { %976 = vmatpush3.msra.mxu0 %v306_v21  ;;  %1011 = vmatpush3.msra.mxu1 %v338_v22  ;;  %v327_v4 = vld [vmem:[#allocation4 + $0x100] sm:$0xff]  ;;  %v558_v17 = vld [vmem:[#allocation6 + $0x1c8] sm:$0xff]  ;;  %v560_v18 = vld [vmem:[#allocation6 + $0x1d8] sm:$0xff] }
  0x60   :  { %977 = vmatprep.subr.mxu0 %v321_v23  ;;  %1012 = vmatprep.subr.mxu1 %v353_v24  ;;  %v561_v15 = vld [vmem:[#allocation6 + $0x1e0] sm:$0xff]  ;;  %v559_v20 = vld [vmem:[#allocation6 + $0x1d0] sm:$0xff]  ;;  %v554_v21 = vld [vmem:[#allocation6 + $0x1a8] sm:$0xff] }
  0x61   :  { %978 = vmatpush3.msra.mxu0 %v305_v25  ;;  %1013 = vmatpush3.msra.mxu1 %v337_v26  ;;  %v557_v19 = vld [vmem:[#allocation6 + $0x1c0] sm:$0xff]  ;;  %v556_v22 = vld [vmem:[#allocation6 + $0x1b8] sm:$0xff]  ;;  %v555_v24 = vld [vmem:[#allocation6 + $0x1b0] sm:$0xff] }
  0x62   :  { %979 = vmatprep.subr.mxu0 %v320_v27  ;;  %1014 = vmatprep.subr.mxu1 %v352_v28  ;;  %v553_v23 = vld [vmem:[#allocation6 + $0x1a0] sm:$0xff]  ;;  %v550_v25 = vld [vmem:[#allocation6 + $0x188] sm:$0xff]  ;;  %v552_v26 = vld [vmem:[#allocation6 + $0x198] sm:$0xff] }
  0x63   :  { %980 = vmatpush3.msra.mxu0 %v304_v29  ;;  %1015 = vmatpush3.msra.mxu1 %v336_v30  ;;  %v549_v27 = vld [vmem:[#allocation6 + $0x180] sm:$0xff]  ;;  %v551_v28 = vld [vmem:[#allocation6 + $0x190] sm:$0xff]  ;;  %v546_v29 = vld [vmem:[#allocation6 + $0x168] sm:$0xff] }
  0x64   :  { %981 = vmatprep.subr.mxu0 %v319_v31  ;;  %1016 = vmatprep.subr.mxu1 %v351_v32  ;;  %v548_v30 = vld [vmem:[#allocation6 + $0x178] sm:$0xff]  ;;  %v545_v31 = vld [vmem:[#allocation6 + $0x160] sm:$0xff]  ;;  %v547_v32 = vld [vmem:[#allocation6 + $0x170] sm:$0xff] }
  0x65   :  { %982 = vmatpush3.msra.mxu0 %v303_v33  ;;  %1017 = vmatpush3.msra.mxu1 %v335_v34  ;;  %v542_v33 = vld [vmem:[#allocation6 + $0x148] sm:$0xff]  ;;  %v544_v34 = vld [vmem:[#allocation6 + $0x158] sm:$0xff] }
  0x66   :  { %983 = vmatprep.subr.mxu0 %v318_v35  ;;  %1018 = vmatprep.subr.mxu1 %v350_v36  ;;  %v541_v35 = vld [vmem:[#allocation6 + $0x140] sm:$0xff]  ;;  %v543_v36 = vld [vmem:[#allocation6 + $0x150] sm:$0xff] }
  0x67   :  { %984 = vmatpush3.msra.mxu0 %v302_v37  ;;  %1019 = vmatpush3.msra.mxu1 %v334_v38  ;;  %v538_v37 = vld [vmem:[#allocation6 + $0x128] sm:$0xff]  ;;  %v540_v38 = vld [vmem:[#allocation6 + $0x138] sm:$0xff] }
  0x68   :  { %985 = vmatprep.subr.mxu0 %v317_v39  ;;  %1020 = vmatprep.subr.mxu1 %v349_v40  ;;  %v537_v39 = vld [vmem:[#allocation6 + $0x120] sm:$0xff]  ;;  %v539_v40 = vld [vmem:[#allocation6 + $0x130] sm:$0xff] }
  0x69   :  { %986 = vmatpush3.msra.mxu0 %v301_v41  ;;  %1021 = vmatpush3.msra.mxu1 %v333_v42  ;;  %v534_v41 = vld [vmem:[#allocation6 + $0x108] sm:$0xff]  ;;  %v536_v42 = vld [vmem:[#allocation6 + $0x118] sm:$0xff] }
  0x6a   :  { %987 = vmatprep.subr.mxu0 %v316_v43  ;;  %1022 = vmatprep.subr.mxu1 %v348_v44  ;;  %v533_v43 = vld [vmem:[#allocation6 + $0x100] sm:$0xff]  ;;  %v535_v44 = vld [vmem:[#allocation6 + $0x110] sm:$0xff] }
  0x6b   :  { %988 = vmatpush3.msra.mxu0 %v300_v45  ;;  %1023 = vmatpush3.msra.mxu1 %v332_v46  ;;  %v530_v45 = vld [vmem:[#allocation6 + $0xe8] sm:$0xff]  ;;  %v532_v46 = vld [vmem:[#allocation6 + $0xf8] sm:$0xff] }
  0x6c   :  { %989 = vmatprep.subr.mxu0 %v315_v47  ;;  %1024 = vmatprep.subr.mxu1 %v347_v48  ;;  %v529_v47 = vld [vmem:[#allocation6 + $0xe0] sm:$0xff]  ;;  %v531_v48 = vld [vmem:[#allocation6 + $0xf0] sm:$0xff] }
  0x6d   :  { %990 = vmatpush3.msra.mxu0 %v299_v49  ;;  %1025 = vmatpush3.msra.mxu1 %v331_v50  ;;  %v526_v49 = vld [vmem:[#allocation6 + $0xc8] sm:$0xff]  ;;  %v528_v50 = vld [vmem:[#allocation6 + $0xd8] sm:$0xff] }
  0x6e   :  { %991 = vmatprep.subr.mxu0 %v314_v51  ;;  %1026 = vmatprep.subr.mxu1 %v346_v52  ;;  %v525_v51 = vld [vmem:[#allocation6 + $0xc0] sm:$0xff]  ;;  %v527_v52 = vld [vmem:[#allocation6 + $0xd0] sm:$0xff] }
  0x6f   :  { %992 = vmatpush3.msra.mxu0 %v298_v53  ;;  %1027 = vmatpush3.msra.mxu1 %v330_v54  ;;  %v522_v53 = vld [vmem:[#allocation6 + $0xa8] sm:$0xff]  ;;  %v524_v54 = vld [vmem:[#allocation6 + $0xb8] sm:$0xff] }
  0x70   :  { %993 = vmatprep.subr.mxu0 %v313_v55  ;;  %1028 = vmatprep.subr.mxu1 %v345_v56  ;;  %v521_v55 = vld [vmem:[#allocation6 + $0xa0] sm:$0xff]  ;;  %v523_v56 = vld [vmem:[#allocation6 + $0xb0] sm:$0xff] }
  0x71   :  { %994 = vmatpush3.msra.mxu0 %v297_v57  ;;  %1029 = vmatpush3.msra.mxu1 %v329_v58  ;;  %v518_v57 = vld [vmem:[#allocation6 + $0x88] sm:$0xff]  ;;  %v520_v58 = vld [vmem:[#allocation6 + $0x98] sm:$0xff] }
  0x72   :  { %995 = vmatprep.subr.mxu0 %v312_v59  ;;  %1030 = vmatprep.subr.mxu1 %v344_v60  ;;  %v517_v59 = vld [vmem:[#allocation6 + $0x80] sm:$0xff]  ;;  %v519_v60 = vld [vmem:[#allocation6 + $0x90] sm:$0xff] }
  0x73   :  { %996 = vmatpush3.msra.mxu0 %v296_v61  ;;  %1031 = vmatpush3.msra.mxu1 %v328_v62  ;;  %v514_v61 = vld [vmem:[#allocation6 + $0x68] sm:$0xff]  ;;  %v516_v62 = vld [vmem:[#allocation6 + $0x78] sm:$0xff] }
  0x74   :  { %997 = vmatprep.subr.mxu0 %v311_v63  ;;  %1032 = vmatprep.subr.mxu1 %v343_v1  ;;  %v513_v63 = vld [vmem:[#allocation6 + $0x60] sm:$0xff]  ;;  %v515_v1 = vld [vmem:[#allocation6 + $0x70] sm:$0xff] }
  0x75   :  { %998 = vmatpush3.msra.mxu0 %v295_v3  ;;  %1033 = vmatpush3.msra.mxu1 %v327_v4  ;;  %v512_v3 = vld [vmem:[#allocation6 + $0x58] sm:$0xff]  ;;  %v509_v4 = vld [vmem:[#allocation6 + $0x40] sm:$0xff] }
  0x76   :  { %587 = vmatprep.subr.mxu0 %v562_v5  ;;  %658 = vmatprep.subr.mxu1 %v564_v6  ;;  %v511_v5 = vld [vmem:[#allocation6 + $0x50] sm:$0xff]  ;;  %v506_v6 = vld [vmem:[#allocation6 + $0x28] sm:$0xff] }
 0x115   :  { %v215_v7 = vpop.f32.mrf.mxu0  ;;  %v286_v8 = vpop.f32.mrf.mxu1 }
 0x116   :  { %v293_v9 = vmax.f32 %v286_v8, 0.0  ;;  %v291_v14 = vmax.f32 %v215_v7, 0.0  ;;  %v508_v7 = vld [vmem:[#allocation6 + $0x38] sm:$0xff]  ;;  %v505_v8 = vld [vmem:[#allocation6 + $0x20] sm:$0xff] }
 0x117   :  { %v217_v10 = vpop.f32.mrf.mxu0  ;;  %v288_v11 = vpop.f32.mrf.mxu1 }
 0x118   :  { %v292_v12 = vmax.f32 %v217_v10, 0.0  ;;  %v294_v13 = vmax.f32 %v288_v11, 0.0  ;;  %v502_v10 = vld [vmem:[#allocation6 + $0x8] sm:$0xff]  ;;  %v504_v11 = vld [vmem:[#allocation6 + $0x18] sm:$0xff] }
 0x11a   :  { %424 = vmatprep.mubr.f32.mxu0 %v292_v12  ;;  %494 = vmatprep.mubr.f32.mxu1 %v294_v13  ;;  %v501_v12 = vld [vmem:[#allocation6] sm:$0xff]  ;;  %v503_v13 = vld [vmem:[#allocation6 + $0x10] sm:$0xff] }
 0x11b   :  { %425 = vmatmul.mubr.f32.vlgmr.msra.gmra.mxu0 %v291_v14  ;;  %495 = vmatmul.mubr.f32.vlgmr.msra.gmra.mxu1 %v293_v9  ;;  %v507_v9 = vld [vmem:[#allocation6 + $0x30] sm:$0xff]  ;;  %v764_v14 = vld [vmem:[#allocation7 + $0xf8] sm:$0xff] }
 0x11c   :  { %588 = vmatpush1.msra.mxu0 %v561_v15  ;;  %659 = vmatpush1.msra.mxu1 %v563_v16  ;;  %v796_v15 = vld [vmem:[#allocation7 + $0x1f8] sm:$0xff] }
 0x11d   :  { %589 = vmatprep.subr.mxu0 %v558_v17  ;;  %660 = vmatprep.subr.mxu1 %v560_v18  ;;  %v359_v18 = vld [vmem:[%s1307_s3] sm:$0x1] }
 0x11e   :  { %590 = vmatpush1.msra.mxu0 %v557_v19  ;;  %661 = vmatpush1.msra.mxu1 %v559_v20 }
 0x11f   :  { %591 = vmatprep.subr.mxu0 %v554_v21  ;;  %662 = vmatprep.subr.mxu1 %v556_v22 }
 0x120   :  { %592 = vmatpush1.msra.mxu0 %v553_v23  ;;  %663 = vmatpush1.msra.mxu1 %v555_v24 }
 0x121   :  { %593 = vmatprep.subr.mxu0 %v550_v25  ;;  %664 = vmatprep.subr.mxu1 %v552_v26  ;;  %v748_v26 = vld [vmem:[#allocation7 + $0x78] sm:$0xff] }
 0x122   :  { %594 = vmatpush1.msra.mxu0 %v549_v27  ;;  %665 = vmatpush1.msra.mxu1 %v551_v28  ;;  %v780_v27 = vld [vmem:[#allocation7 + $0x178] sm:$0xff]  ;;  %v763_v28 = vld [vmem:[#allocation7 + $0xf0] sm:$0xff] }
 0x123   :  { %595 = vmatprep.subr.mxu0 %v546_v29  ;;  %666 = vmatprep.subr.mxu1 %v548_v30  ;;  %v795_v29 = vld [vmem:[#allocation7 + $0x1f0] sm:$0xff] }
 0x124   :  { %596 = vmatpush1.msra.mxu0 %v545_v31  ;;  %667 = vmatpush1.msra.mxu1 %v547_v32  ;;  %v747_v30 = vld [vmem:[#allocation7 + $0x70] sm:$0xff]  ;;  %v762_v32 = vld [vmem:[#allocation7 + $0xe8] sm:$0xff] }
 0x125   :  { %597 = vmatprep.subr.mxu0 %v542_v33  ;;  %668 = vmatprep.subr.mxu1 %v544_v34  ;;  %v779_v31 = vld [vmem:[#allocation7 + $0x170] sm:$0xff]  ;;  %v794_v33 = vld [vmem:[#allocation7 + $0x1e8] sm:$0xff] }
 0x126   :  { %598 = vmatpush1.msra.mxu0 %v541_v35  ;;  %669 = vmatpush1.msra.mxu1 %v543_v36  ;;  %v746_v34 = vld [vmem:[#allocation7 + $0x68] sm:$0xff]  ;;  %v761_v36 = vld [vmem:[#allocation7 + $0xe0] sm:$0xff] }
 0x127   :  { %599 = vmatprep.subr.mxu0 %v538_v37  ;;  %670 = vmatprep.subr.mxu1 %v540_v38  ;;  %v778_v35 = vld [vmem:[#allocation7 + $0x168] sm:$0xff]  ;;  %v793_v37 = vld [vmem:[#allocation7 + $0x1e0] sm:$0xff] }
 0x128   :  { %600 = vmatpush1.msra.mxu0 %v537_v39  ;;  %671 = vmatpush1.msra.mxu1 %v539_v40  ;;  %v745_v38 = vld [vmem:[#allocation7 + $0x60] sm:$0xff]  ;;  %v760_v40 = vld [vmem:[#allocation7 + $0xd8] sm:$0xff] }
 0x129   :  { %601 = vmatprep.subr.mxu0 %v534_v41  ;;  %672 = vmatprep.subr.mxu1 %v536_v42  ;;  %v777_v39 = vld [vmem:[#allocation7 + $0x160] sm:$0xff]  ;;  %v792_v41 = vld [vmem:[#allocation7 + $0x1d8] sm:$0xff] }
 0x12a   :  { %602 = vmatpush1.msra.mxu0 %v533_v43  ;;  %673 = vmatpush1.msra.mxu1 %v535_v44  ;;  %v744_v42 = vld [vmem:[#allocation7 + $0x58] sm:$0xff]  ;;  %v759_v44 = vld [vmem:[#allocation7 + $0xd0] sm:$0xff] }
 0x12b   :  { %603 = vmatprep.subr.mxu0 %v530_v45  ;;  %674 = vmatprep.subr.mxu1 %v532_v46  ;;  %v776_v43 = vld [vmem:[#allocation7 + $0x158] sm:$0xff]  ;;  %v791_v45 = vld [vmem:[#allocation7 + $0x1d0] sm:$0xff] }
 0x12c   :  { %604 = vmatpush1.msra.mxu0 %v529_v47  ;;  %675 = vmatpush1.msra.mxu1 %v531_v48  ;;  %v743_v46 = vld [vmem:[#allocation7 + $0x50] sm:$0xff]  ;;  %v758_v48 = vld [vmem:[#allocation7 + $0xc8] sm:$0xff] }
 0x12d   :  { %605 = vmatprep.subr.mxu0 %v526_v49  ;;  %676 = vmatprep.subr.mxu1 %v528_v50  ;;  %v775_v47 = vld [vmem:[#allocation7 + $0x150] sm:$0xff]  ;;  %v790_v49 = vld [vmem:[#allocation7 + $0x1c8] sm:$0xff] }
 0x12e   :  { %606 = vmatpush1.msra.mxu0 %v525_v51  ;;  %677 = vmatpush1.msra.mxu1 %v527_v52  ;;  %v742_v50 = vld [vmem:[#allocation7 + $0x48] sm:$0xff]  ;;  %v757_v52 = vld [vmem:[#allocation7 + $0xc0] sm:$0xff] }
 0x12f   :  { %607 = vmatprep.subr.mxu0 %v522_v53  ;;  %678 = vmatprep.subr.mxu1 %v524_v54  ;;  %v774_v51 = vld [vmem:[#allocation7 + $0x148] sm:$0xff]  ;;  %v789_v53 = vld [vmem:[#allocation7 + $0x1c0] sm:$0xff] }
 0x130   :  { %651 = vmatprep.mubr.f32.mxu0 %v1214_v0  ;;  %722 = vmatprep.mubr.f32.mxu1 %v1214_v0  ;;  %v510_v0 = vld [vmem:[#allocation6 + $0x48] sm:$0xff]  ;;  %v741_v54 = vld [vmem:[#allocation7 + $0x40] sm:$0xff] }
 0x131   :  { %608 = vmatpush1.msra.mxu0 %v521_v55  ;;  %679 = vmatpush1.msra.mxu1 %v523_v56  ;;  %v773_v55 = vld [vmem:[#allocation7 + $0x140] sm:$0xff]  ;;  %v756_v56 = vld [vmem:[#allocation7 + $0xb8] sm:$0xff] }
 0x132   :  { %609 = vmatprep.subr.mxu0 %v518_v57  ;;  %680 = vmatprep.subr.mxu1 %v520_v58  ;;  %v788_v57 = vld [vmem:[#allocation7 + $0x1b8] sm:$0xff] }
 0x133   :  { %610 = vmatpush1.msra.mxu0 %v517_v59  ;;  %681 = vmatpush1.msra.mxu1 %v519_v60  ;;  %v740_v58 = vld [vmem:[#allocation7 + $0x38] sm:$0xff]  ;;  %v755_v60 = vld [vmem:[#allocation7 + $0xb0] sm:$0xff] }
 0x134   :  { %611 = vmatprep.subr.mxu0 %v514_v61  ;;  %682 = vmatprep.subr.mxu1 %v516_v62  ;;  %v772_v59 = vld [vmem:[#allocation7 + $0x138] sm:$0xff]  ;;  %v787_v61 = vld [vmem:[#allocation7 + $0x1b0] sm:$0xff] }
 0x135   :  { %612 = vmatpush1.msra.mxu0 %v513_v63  ;;  %683 = vmatpush1.msra.mxu1 %v515_v1  ;;  %v739_v62 = vld [vmem:[#allocation7 + $0x30] sm:$0xff]  ;;  %v754_v1 = vld [vmem:[#allocation7 + $0xa8] sm:$0xff] }
 0x136   :  { %613 = vmatprep.subr.mxu0 %v510_v0  ;;  %684 = vmatprep.subr.mxu1 %v512_v3  ;;  %v771_v63 = vld [vmem:[#allocation7 + $0x130] sm:$0xff]  ;;  %v786_v0 = vld [vmem:[#allocation7 + $0x1a8] sm:$0xff] }
 0x137   :  { %614 = vmatpush1.msra.mxu0 %v509_v4  ;;  %685 = vmatpush1.msra.mxu1 %v511_v5  ;;  %v738_v3 = vld [vmem:[#allocation7 + $0x28] sm:$0xff]  ;;  %v753_v5 = vld [vmem:[#allocation7 + $0xa0] sm:$0xff] }
 0x138   :  { %615 = vmatprep.subr.mxu0 %v506_v6  ;;  %686 = vmatprep.subr.mxu1 %v508_v7  ;;  %v770_v4 = vld [vmem:[#allocation7 + $0x128] sm:$0xff]  ;;  %v785_v6 = vld [vmem:[#allocation7 + $0x1a0] sm:$0xff] }
 0x139   :  { %616 = vmatpush1.msra.mxu0 %v505_v8  ;;  %687 = vmatpush1.msra.mxu1 %v507_v9  ;;  %v737_v7 = vld [vmem:[#allocation7 + $0x20] sm:$0xff]  ;;  %v752_v9 = vld [vmem:[#allocation7 + $0x98] sm:$0xff] }
 0x13a   :  { %617 = vmatprep.subr.mxu0 %v502_v10  ;;  %688 = vmatprep.subr.mxu1 %v504_v11  ;;  %v769_v8 = vld [vmem:[#allocation7 + $0x120] sm:$0xff]  ;;  %v784_v10 = vld [vmem:[#allocation7 + $0x198] sm:$0xff] }
 0x13b   :  { %618 = vmatpush1.msra.mxu0 %v501_v12  ;;  %689 = vmatpush1.msra.mxu1 %v503_v13  ;;  %v736_v11 = vld [vmem:[#allocation7 + $0x18] sm:$0xff]  ;;  %v751_v13 = vld [vmem:[#allocation7 + $0x90] sm:$0xff] }
 0x13c   :  { %1037 = vmatprep.subr.mxu0 %v764_v14  ;;  %1072 = vmatprep.subr.mxu1 %v796_v15  ;;  %v768_v12 = vld [vmem:[#allocation7 + $0x118] sm:$0xff]  ;;  %v783_v14 = vld [vmem:[#allocation7 + $0x190] sm:$0xff] }
 0x13d   :  { %v735_v15 = vld [vmem:[#allocation7 + $0x10] sm:$0xff] }
 0x1db   :  { %v999_v16 = vpop.f32.mrf.mxu0  ;;  %v1034_v17 = vpop.f32.mrf.mxu1 }
 0x1dd   :  { %v1000_v19 = vpop.f32.mrf.mxu0  ;;  %v1035_v20 = vpop.f32.mrf.mxu1 }
 0x1de   :  { %v1001_v21 = vadd.f32 %v1000_v19, %v999_v16  ;;  %v1036_v23 = vadd.f32 %v1035_v20, %v1034_v17  ;;  %v767_v16 = vld [vmem:[#allocation7 + $0x110] sm:$0xff]  ;;  %v750_v17 = vld [vmem:[#allocation7 + $0x88] sm:$0xff] }
 0x1df   :  { %v734_v19 = vld [vmem:[#allocation7 + $0x8] sm:$0xff] }
 0x1e0   :  { %v427_v22 = vadd.f32 %v1001_v21, %v359_v18  ;;  %v782_v18 = vld [vmem:[#allocation7 + $0x188] sm:$0xff]  ;;  %v749_v21 = vld [vmem:[#allocation7 + $0x80] sm:$0xff] }
 0x1e1   :  { %v766_v20 = vld [vmem:[#allocation7 + $0x108] sm:$0xff] }
 0x1e2   :  { %v497_v24 = vadd.f32 %v1036_v23, %v427_v22  ;;  %v781_v22 = vld [vmem:[#allocation7 + $0x180] sm:$0xff] }
 0x1e3   :  { %v733_v23 = vld [vmem:[#allocation7] sm:$0xff] }
 0x1e4   :  { %v500_v25 = vmax.f32 %v497_v24, 0.0  ;;  %v765_v24 = vld [vmem:[#allocation7 + $0x100] sm:$0xff] }
 0x1e6   :  { %652 = vmatmul.mubr.f32.vlgmr.msra.gmra.mxu0 %v500_v25  ;;  %723 = vmatmul.mubr.f32.vlgmr.msra.gmra.mxu1 %v500_v25  ;;  %v567_v25 = vlaneseq }
 0x1e7   :  { %1038 = vmatpush3.msra.mxu0 %v748_v26  ;;  %1073 = vmatpush3.msra.mxu1 %v780_v27 }
 0x1e8   :  { %1039 = vmatprep.subr.mxu0 %v763_v28  ;;  %1074 = vmatprep.subr.mxu1 %v795_v29  ;;  %v568_v26 = vshrl.u32 %v567_v25, 7  ;;  %v565_v29 = vld [vmem:[%s1309_s5] sm:$0xf] }
 0x1e9   :  { %1040 = vmatpush3.msra.mxu0 %v747_v30  ;;  %1075 = vmatpush3.msra.mxu1 %v779_v31 }
 0x1ea   :  { %1041 = vmatprep.subr.mxu0 %v762_v32  ;;  %1076 = vmatprep.subr.mxu1 %v794_v33  ;;  %v569_v27 = vsub.s32 0, %v568_v26  ;;  %v577_v28 = vsub.s32 2, %v568_v26  ;;  %v573_v30 = vsub.s32 1, %v568_v26  ;;  %v581_v31 = vsub.s32 3, %v568_v26 }
 0x1eb   :  { %1042 = vmatpush3.msra.mxu0 %v746_v34  ;;  %1077 = vmatpush3.msra.mxu1 %v778_v35 }
 0x1ec   :  { %1043 = vmatprep.subr.mxu0 %v761_v36  ;;  %1078 = vmatprep.subr.mxu1 %v793_v37  ;;  %v570_v32 = vrot.slane %v565_v29, %v569_v27  ;;  %v578_v33 = vrot.slane %v565_v29, %v577_v28  ;;  %v574_v34 = vrot.slane %v565_v29, %v573_v30 }
 0x1ed   :  { %1044 = vmatpush3.msra.mxu0 %v745_v38  ;;  %1079 = vmatpush3.msra.mxu1 %v777_v39  ;;  %v582_v35 = vrot.slane %v565_v29, %v581_v31 }
 0x1ee   :  { %1045 = vmatprep.subr.mxu0 %v760_v40  ;;  %1080 = vmatprep.subr.mxu1 %v792_v41 }
 0x1ef   :  { %1046 = vmatpush3.msra.mxu0 %v744_v42  ;;  %1081 = vmatpush3.msra.mxu1 %v776_v43 }
 0x1f0   :  { %1047 = vmatprep.subr.mxu0 %v759_v44  ;;  %1082 = vmatprep.subr.mxu1 %v791_v45 }
 0x1f1   :  { %1048 = vmatpush3.msra.mxu0 %v743_v46  ;;  %1083 = vmatpush3.msra.mxu1 %v775_v47 }
 0x1f2   :  { %1049 = vmatprep.subr.mxu0 %v758_v48  ;;  %1084 = vmatprep.subr.mxu1 %v790_v49 }
 0x1f3   :  { %1050 = vmatpush3.msra.mxu0 %v742_v50  ;;  %1085 = vmatpush3.msra.mxu1 %v774_v51  ;;  %v797_v50 = vld [vmem:[%s1311_s7] sm:$0x1] }
 0x1f4   :  { %1051 = vmatprep.subr.mxu0 %v757_v52  ;;  %1086 = vmatprep.subr.mxu1 %v789_v53  ;;  %v939_v53 = vand.u32 127, %v567_v25 }
 0x1f5   :  { %1052 = vmatpush3.msra.mxu0 %v741_v54  ;;  %1087 = vmatpush3.msra.mxu1 %v773_v55 }
 0x1f6   :  { %1053 = vmatprep.subr.mxu0 %v756_v56  ;;  %1088 = vmatprep.subr.mxu1 %v788_v57  ;;  %vm956_vm1 = vcmp.eq.s32.totalorder %v939_v53, 81  ;;  %vm940_vm2 = vcmp.lt.s32.totalorder %v939_v53, 81 }
 0x1f7   :  { %1054 = vmatpush3.msra.mxu0 %v740_v58  ;;  %1089 = vmatpush3.msra.mxu1 %v772_v59 }
 0x1f8   :  { %1055 = vmatprep.subr.mxu0 %v755_v60  ;;  %1090 = vmatprep.subr.mxu1 %v787_v61 }
 0x1f9   :  { %1056 = vmatpush3.msra.mxu0 %v739_v62  ;;  %1091 = vmatpush3.msra.mxu1 %v771_v63 }
 0x1fa   :  { %1057 = vmatprep.subr.mxu0 %v754_v1  ;;  %1092 = vmatprep.subr.mxu1 %v786_v0 }
 0x1fb   :  { %1058 = vmatpush3.msra.mxu0 %v738_v3  ;;  %1093 = vmatpush3.msra.mxu1 %v770_v4 }
 0x1fc   :  { %1059 = vmatprep.subr.mxu0 %v753_v5  ;;  %1094 = vmatprep.subr.mxu1 %v785_v6 }
 0x1fd   :  { %1060 = vmatpush3.msra.mxu0 %v737_v7  ;;  %1095 = vmatpush3.msra.mxu1 %v769_v8 }
 0x1fe   :  { %1061 = vmatprep.subr.mxu0 %v752_v9  ;;  %1096 = vmatprep.subr.mxu1 %v784_v10 }
 0x1ff   :  { %1062 = vmatpush3.msra.mxu0 %v736_v11  ;;  %1097 = vmatpush3.msra.mxu1 %v768_v12 }
 0x200   :  { %1063 = vmatprep.subr.mxu0 %v751_v13  ;;  %1098 = vmatprep.subr.mxu1 %v783_v14 }
 0x201   :  { %1064 = vmatpush3.msra.mxu0 %v735_v15  ;;  %1099 = vmatpush3.msra.mxu1 %v767_v16 }
 0x202   :  { %1065 = vmatprep.subr.mxu0 %v750_v17  ;;  %1100 = vmatprep.subr.mxu1 %v782_v18 }
 0x203   :  { %1066 = vmatpush3.msra.mxu0 %v734_v19  ;;  %1101 = vmatpush3.msra.mxu1 %v766_v20 }
 0x204   :  { %1067 = vmatprep.subr.mxu0 %v749_v21  ;;  %1102 = vmatprep.subr.mxu1 %v781_v22 }
 0x205   :  { %1068 = vmatpush3.msra.mxu0 %v733_v23  ;;  %1103 = vmatpush3.msra.mxu1 %v765_v24 }
 0x2a6   :  { %v653_v36 = vpop.f32.mrf.mxu0  ;;  %v724_v37 = vpop.f32.mrf.mxu1 }
 0x2a7   :  { %v654_v38 = vadd.f32 %v653_v36, %v570_v32  ;;  %v725_v39 = vadd.f32 %v724_v37, %v578_v33 }
 0x2a8   :  { %v655_v40 = vpop.f32.mrf.mxu0  ;;  %v726_v41 = vpop.f32.mrf.mxu1 }
 0x2a9   :  { %v656_v42 = vadd.f32 %v655_v40, %v574_v34  ;;  %v727_v43 = vadd.f32 %v726_v41, %v582_v35  ;;  %v729_v46 = vmax.f32 %v654_v38, 0.0  ;;  %v731_v47 = vmax.f32 %v725_v39, 0.0 }
 0x2ab   :  { %v730_v44 = vmax.f32 %v656_v42, 0.0  ;;  %v732_v45 = vmax.f32 %v727_v43, 0.0 }
 0x2ad   :  { %862 = vmatprep.mubr.f32.mxu0 %v730_v44  ;;  %932 = vmatprep.mubr.f32.mxu1 %v732_v45 }
 0x2ae   :  { %863 = vmatmul.mubr.f32.vlgmr.msra.gmra.mxu0 %v729_v46  ;;  %933 = vmatmul.mubr.f32.vlgmr.msra.gmra.mxu1 %v731_v47 }
 0x36e   :  { %v1069_v48 = vpop.f32.mrf.mxu0  ;;  %v1104_v49 = vpop.f32.mrf.mxu1 }
 0x370   :  { %v1070_v51 = vpop.f32.mrf.mxu0  ;;  %v1105_v52 = vpop.f32.mrf.mxu1 }
 0x371   :  { %v1071_v54 = vadd.f32 %v1070_v51, %v1069_v48  ;;  %v1106_v56 = vadd.f32 %v1105_v52, %v1104_v49 }
 0x373   :  { %v865_v55 = vadd.f32 %v1071_v54, %v797_v50 }
 0x375   :  { %v935_v57 = vadd.f32 %v1106_v56, %v865_v55 }
 0x377   :  { %v942_v58 = vsel %vm941_vm0, -1e+09, %v935_v57  ;;  %v957_v59 = vsel %vm956_vm1, %v935_v57, 0.0 }
 0x378   :  { %v943_v60 = vsel %vm940_vm2, %v942_v58, -inf }
 0x379   :  { %v945_v61 = vsel %vm944_vm3, %v943_v60, -inf }
 0x37a   :  { %946 = vmax.xlane.f32.xlu0 %v945_v61 }
 0x403   :  { %v947_v62 = vpop.xlane.xlu0 %946 }
 0x404   :  { %v948_v63 = vsub.f32 %v943_v60, %v947_v62 }
 0x406   :  { %v949_v1 = vmul.f32 1.442695, %v948_v63 }
 0x408   :  { %1116 = vpow2.f32 %v949_v1 }
 0x415   :  { %v1117_v0 = vpop.eup %1116 }
 0x416   :  { %v951_v3 = vsel %vm944_vm3, %v1117_v0, 0.0 }
 0x417   :  { %952 = vadd.xlane.f32.xlu0 %v951_v3 }
 0x4a0   :  { %v953_v4 = vpop.xlane.xlu0 %952 }
 0x4a1   :  { %1118 = vrcp.f32 %v953_v4 }
 0x4ae   :  { %v1119_v2 = vpop.eup %1118 }
 0x4af   :  { %v955_v5 = vmul.f32 %v1119_v2, %v1117_v0 }
 0x4b1   :  { %v958_v6 = vsel %vm940_vm2, %v955_v5, %v957_v59 }
 0x4b2   :  { %959 = vst [vmem:[%s1312_s8] sm:$0x1] %v958_v6 }
 0x4b3   :  { %964 = vsyncpa [#allocation3], 1 }
 0x4b4   :  { %965 = vsyncpa [#allocation5], 1 }
 0x4b5   :  { %966 = vsyncpa [#allocation8], 1 }

</bundles_post_ra>
